<compile_context>
chip_gen: v5e
topology: v5e:2x2
jax: 0.10.0
libtpu: 0.0.40
codegen_flags: <defaults>
</compile_context>

<pallas_src>
import functools

import jax
import jax.numpy as jnp
from jax.experimental import pallas as pl
from jax.experimental.pallas import tpu as pltpu


def link_predictor_kernel(sf_ref, nf_ref, w_label_ref, w_out_ref, vec_ref,
                          out_ref, *, dim, hidden, compute_dtype):
    f32 = jnp.float32

    # ---- transpose the batch tile to feature-major (batch -> 128-lane axis) ----
    sf_t = jnp.transpose(sf_ref[...].astype(f32))         # (dim, bb)
    nf_t = jnp.transpose(nf_ref[...].astype(f32))         # (2H, bb)

    # ---- hadamard of the two endpoints (f32 VPU; rows are sublane-aligned) ----
    prod_t = nf_t[:hidden, :] * nf_t[hidden:, :]           # (H, bb)

    # ---- packed small vectors: col 0 = [b_label; b_out; b_lin], col 1 = w_lin halves ----
    vec = vec_ref[...]                                      # (dim+H+1, 2) f32
    b_label = vec[:dim, 0:1]                                # (dim, 1)
    b_out = vec[dim:dim + hidden, 0:1]                      # (H, 1)
    b_lin = vec[dim + hidden:dim + hidden + 1, 0:1]         # (1, 1)
    w_lin_sf = vec[:dim, 1:2]                               # (dim, 1)
    w_lin_feat = vec[dim:dim + hidden, 1:2]                 # (H, 1)

    # ---- label branch: h^T = W_label(BN-folded, [out,in]) @ sf^T -> (dim, bb) ----
    h_t = jnp.dot(w_label_ref[...], sf_t.astype(compute_dtype),
                  preferred_element_type=f32)
    h_t = jnp.maximum(h_t + b_label, 0.0)

    # ---- feature branch: f^T = W_out(BN-folded, [out,in]) @ prod^T -> (H, bb) ----
    f_t = jnp.dot(w_out_ref[...], prod_t.astype(compute_dtype),
                  preferred_element_type=f32)
    f_t = jnp.maximum(f_t + b_out, 0.0)

    # ---- final Linear(dim+H, 1): weighted row-accumulate -> lane-dense (1, bb) ----
    out_row = (jnp.sum(h_t * w_lin_sf, axis=0, keepdims=True)
               + jnp.sum(f_t * w_lin_feat, axis=0, keepdims=True)
               + b_lin)
    out_ref[...] = out_row.astype(out_ref.dtype)


def _num_tensorcores(default=1):
    """Best-effort TensorCore count (v7x has 2 per chip; v5e/v6e have 1)."""
    try:
        info = pltpu.get_tpu_info()
        for attr in ("num_cores", "core_count", "num_tensorcores",
                     "tensorcores_per_chip", "cores_per_chip"):
            v = getattr(info, attr, None)
            if isinstance(v, int) and v > 0:
                return v
    except Exception:
        pass
    try:
        v = getattr(jax.devices()[0], "num_cores", None)
        if isinstance(v, int) and v > 0:
            return v
    except Exception:
        pass
    return default


def _pick_block_b(B, block_b, num_cores):
    """Biggest tile allowed (amortize ~0.35us/grid-step); split the batch only
    when there is more than one TensorCore to feed; always a multiple of 128 so
    the feature-major intermediates and the (1, bb) output row are tile-aligned
    and lane-dense."""
    target = min(block_b, B)
    if num_cores > 1:
        target = min(target, pl.cdiv(B, num_cores))
    return max(128, ((target + 127) // 128) * 128)


def link_predictor_forward(sf, node_features, params, *, block_b=2048,
                           compute_dtype=jnp.bfloat16, num_cores=None):
    """sf: [B, dim] f32, node_features: [B, 2, H] f32 -> [B, 1] f32."""
    B, dim = sf.shape
    H = node_features.shape[-1]
    if num_cores is None:
        num_cores = _num_tensorcores()

    # ---- one-time param transform: fold eval-mode BN + bias into W/b; weights stored [out, in] ----
    eps = 1e-5  # PyTorch BatchNorm1d default
    bnl_scale = params["bn_labels_gamma"] / jnp.sqrt(params["bn_labels_var"] + eps)
    bnl_shift = params["bn_labels_beta"] - params["bn_labels_mean"] * bnl_scale
    w_label_t = (params["label_w"] * bnl_scale[None, :]).T.astype(compute_dtype)  # (dim, dim)
    b_label = params["label_b"] * bnl_scale + bnl_shift

    bnf_scale = params["bn_feats_gamma"] / jnp.sqrt(params["bn_feats_var"] + eps)
    bnf_shift = params["bn_feats_beta"] - params["bn_feats_mean"] * bnf_scale
    w_out_t = (params["lin_out_w"] * bnf_scale[None, :]).T.astype(compute_dtype)  # (H, H)
    b_out = params["lin_out_b"] * bnf_scale + bnf_shift

    w_lin = params["lin_w"][:, 0]                                                 # (dim+H,)
    vec = jnp.zeros((dim + H + 1, 2), jnp.float32)
    vec = vec.at[:dim, 0].set(b_label)
    vec = vec.at[dim:dim + H, 0].set(b_out)
    vec = vec.at[dim + H, 0].set(params["lin_b"][0])
    vec = vec.at[:dim, 1].set(w_lin[:dim])
    vec = vec.at[dim:dim + H, 1].set(w_lin[dim:])

    # ---- inputs: bf16 in HBM (halves bytes); node_features flattened to 2-D (free reshape) ----
    sf_c = sf.astype(compute_dtype)
    nf_c = node_features.reshape(B, 2 * H).astype(compute_dtype)

    bb = _pick_block_b(B, block_b, num_cores)
    Bp = pl.cdiv(B, bb) * bb
    if Bp != B:
        sf_c = jnp.pad(sf_c, ((0, Bp - B), (0, 0)))
        nf_c = jnp.pad(nf_c, ((0, Bp - B), (0, 0)))

    kernel = functools.partial(link_predictor_kernel, dim=dim, hidden=H,
                               compute_dtype=compute_dtype)

    out_row = pl.pallas_call(
        kernel,
        out_shape=jax.ShapeDtypeStruct((1, Bp), jnp.float32),
        grid=(Bp // bb,),
        in_specs=[
            pl.BlockSpec((bb, dim), lambda i: (i, 0)),          # sf tile
            pl.BlockSpec((bb, 2 * H), lambda i: (i, 0)),        # node_features tile (2-D)
            pl.BlockSpec((dim, dim), lambda i: (0, 0)),          # W_label^T (BN folded)
            pl.BlockSpec((H, H), lambda i: (0, 0)),              # W_out^T   (BN folded)
            pl.BlockSpec((dim + H + 1, 2), lambda i: (0, 0)),    # packed biases + w_lin
        ],
        out_specs=pl.BlockSpec((1, bb), lambda i: (0, i)),        # lane-dense output row
        compiler_params=pltpu.CompilerParams(
            dimension_semantics=("parallel",)),
    )(sf_c, nf_c, w_label_t, w_out_t, vec)

    # (1, Bp) row -> (B, 1); both reshapes are free, padded columns sliced off.
    return out_row.reshape(-1)[:B].reshape(B, 1)


def ref_forward(sf, nf, params):
    """Pure-JAX reference matching the PyTorch forward (eval mode)."""
    eps = 1e-5
    h = sf @ params["label_w"] + params["label_b"]
    h = ((h - params["bn_labels_mean"]) / jnp.sqrt(params["bn_labels_var"] + eps)
         * params["bn_labels_gamma"] + params["bn_labels_beta"])
    h = jnp.maximum(h, 0.0)
    f = nf[:, 0, :] * nf[:, 1, :]
    f = f @ params["lin_out_w"] + params["lin_out_b"]
    f = ((f - params["bn_feats_mean"]) / jnp.sqrt(params["bn_feats_var"] + eps)
         * params["bn_feats_gamma"] + params["bn_feats_beta"])
    f = jnp.maximum(f, 0.0)
    x = jnp.concatenate([h, f], axis=1)
    return x @ params["lin_w"] + params["lin_b"]


def make_params(key, dim, H):
    ks = jax.random.split(key, 12)
    f32 = jnp.float32
    return {
        # label_lin_layer: Linear(dim, dim); stored [in, out]
        "label_w": 0.1 * jax.random.normal(ks[0], (dim, dim), f32),
        "label_b": 0.1 * jax.random.normal(ks[1], (dim,), f32),
        # bn_labels: BatchNorm1d(dim)
        "bn_labels_gamma": 1.0 + 0.1 * jax.random.normal(ks[2], (dim,), f32),
        "bn_labels_beta": 0.1 * jax.random.normal(ks[3], (dim,), f32),
        "bn_labels_mean": 0.05 * jax.random.normal(ks[4], (dim,), f32),
        "bn_labels_var": 1.0 + 0.1 * jax.random.uniform(ks[5], (dim,), f32),
        # lin_out: Linear(H, H)
        "lin_out_w": 0.1 * jax.random.normal(ks[6], (H, H), f32),
        "lin_out_b": 0.1 * jax.random.normal(ks[7], (H,), f32),
        # bn_feats: BatchNorm1d(H)
        "bn_feats_gamma": 1.0 + 0.1 * jax.random.normal(ks[8], (H,), f32),
        "bn_feats_beta": 0.1 * jax.random.normal(ks[9], (H,), f32),
        "bn_feats_mean": 0.05 * jax.random.normal(ks[10], (H,), f32),
        "bn_feats_var": 1.0 + 0.1 * jax.random.uniform(ks[11], (H,), f32),
        # lin: Linear(dim + H, 1)
        "lin_w": 0.1 * jax.random.normal(jax.random.PRNGKey(123), (dim + H, 1), f32),
        "lin_b": jnp.array([0.05], f32),
    }


if __name__ == "__main__":
    key = jax.random.PRNGKey(0)
    B = 250                                    # not a multiple of 8/128: exercises padding
    max_hash_hops = 2
    hidden_channels = 32
    dim = max_hash_hops * (max_hash_hops + 2)  # 8

    k_sf, k_nf, k_p = jax.random.split(key, 3)
    sf = jax.random.normal(k_sf, (B, dim), jnp.float32)
    node_features = jax.random.normal(k_nf, (B, 2, hidden_channels), jnp.float32)
    params = make_params(k_p, dim, hidden_channels)

    ref = ref_forward(sf, node_features, params)

    # exact-math path (f32 everywhere), single grid step
    out_f32 = link_predictor_forward(sf, node_features, params,
                                     compute_dtype=jnp.float32)
    jax.block_until_ready(out_f32)
    assert out_f32.shape == (B, 1)
    assert jnp.allclose(out_f32, ref, atol=1e-4, rtol=1e-4), "f32 mismatch vs reference"

    # forced 2-way split (as on a 2-TensorCore v7x part): multi-step grid + padded batch
    out_split = link_predictor_forward(sf, node_features, params,
                                       compute_dtype=jnp.float32,
                                       block_b=128, num_cores=2)
    jax.block_until_ready(out_split)
    assert jnp.allclose(out_split, ref, atol=1e-4, rtol=1e-4), "tiled path mismatch vs reference"

    # default fast path (bf16 HBM/MXU operands, f32 hadamard / bias / ReLU epilogue)
    out_bf16 = link_predictor_forward(sf, node_features, params)
    jax.block_until_ready(out_bf16)
    assert out_bf16.shape == (B, 1)
    assert jnp.allclose(out_bf16, ref, atol=5e-2, rtol=5e-2), "bf16 mismatch vs reference"

    print("KERNEL_OK")
</pallas_src>

<mosaic_0001>
module attributes {stable_mosaic.version = 11 : i64} {
  func.func @link_predictor_kernel(%arg0: i32, %arg1: memref<256x8xf32, #tpu.memory_space<vmem>>, %arg2: memref<256x64xf32, #tpu.memory_space<vmem>>, %arg3: memref<8x8xf32, #tpu.memory_space<vmem>>, %arg4: memref<32x32xf32, #tpu.memory_space<vmem>>, %arg5: memref<41x2xf32, #tpu.memory_space<vmem>>, %arg6: memref<1x256xf32, #tpu.memory_space<vmem>>) attributes {dimension_semantics = [#tpu.dimension_semantics<parallel>], iteration_bounds = array<i64: 1>, scalar_prefetch = 0 : i64, scratch_operands = 0 : i64, tpu.core_type = #tpu.core_type<tc>, window_params = [{transform_indices = @transform_0, window_bounds = array<i64: 256, 8>}, {transform_indices = @transform_1, window_bounds = array<i64: 256, 64>}, {pipeline_mode = #tpu.pipeline_mode<synchronous>, transform_indices = @transform_2, window_bounds = array<i64: 8, 8>}, {pipeline_mode = #tpu.pipeline_mode<synchronous>, transform_indices = @transform_3, window_bounds = array<i64: 32, 32>}, {pipeline_mode = #tpu.pipeline_mode<synchronous>, transform_indices = @transform_4, window_bounds = array<i64: 41, 2>}, {transform_indices = @transform_5, window_bounds = array<i64: 1, 256>}]} {
    %c0 = arith.constant 0 : index
    %c0_0 = arith.constant 0 : index
    %0 = vector.load %arg1[%c0, %c0_0] : memref<256x8xf32, #tpu.memory_space<vmem>>, vector<256x8xf32>
    %1 = tpu.transpose %0, [1, 0] : vector<256x8xf32> -> vector<8x256xf32>
    %c0_1 = arith.constant 0 : index
    %c0_2 = arith.constant 0 : index
    %2 = vector.load %arg2[%c0_1, %c0_2] : memref<256x64xf32, #tpu.memory_space<vmem>>, vector<256x64xf32>
    %3 = tpu.transpose %2, [1, 0] : vector<256x64xf32> -> vector<64x256xf32>
    %4 = vector.extract_strided_slice %3 {offsets = [0, 0], sizes = [32, 256], strides = [1, 1]} : vector<64x256xf32> to vector<32x256xf32>
    %5 = vector.extract_strided_slice %3 {offsets = [32, 0], sizes = [32, 256], strides = [1, 1]} : vector<64x256xf32> to vector<32x256xf32>
    %6 = arith.mulf %4, %5 : vector<32x256xf32>
    %c0_3 = arith.constant 0 : index
    %c0_4 = arith.constant 0 : index
    %7 = vector.load %arg5[%c0_3, %c0_4] : memref<41x2xf32, #tpu.memory_space<vmem>>, vector<41x2xf32>
    %8 = vector.extract_strided_slice %7 {offsets = [0, 0], sizes = [8, 1], strides = [1, 1]} : vector<41x2xf32> to vector<8x1xf32>
    %9 = vector.extract_strided_slice %7 {offsets = [8, 0], sizes = [32, 1], strides = [1, 1]} : vector<41x2xf32> to vector<32x1xf32>
    %10 = vector.extract_strided_slice %7 {offsets = [40, 0], sizes = [1, 1], strides = [1, 1]} : vector<41x2xf32> to vector<1x1xf32>
    %11 = vector.extract_strided_slice %7 {offsets = [0, 1], sizes = [8, 1], strides = [1, 1]} : vector<41x2xf32> to vector<8x1xf32>
    %12 = vector.extract_strided_slice %7 {offsets = [8, 1], sizes = [32, 1], strides = [1, 1]} : vector<41x2xf32> to vector<32x1xf32>
    %c0_5 = arith.constant 0 : index
    %c0_6 = arith.constant 0 : index
    %13 = vector.load %arg3[%c0_5, %c0_6] : memref<8x8xf32, #tpu.memory_space<vmem>>, vector<8x8xf32>
    %cst = arith.constant dense<0.000000e+00> : vector<8x256xf32>
    %14 = tpu.matmul %13, %1, %cst {dimension_numbers = #tpu.dot_dimension_numbers<[1], [0], [0], [1], [0, 0, 1, 1], [], []>} : vector<8x8xf32>, vector<8x256xf32>, vector<8x256xf32> -> vector<8x256xf32>
    %15 = vector.broadcast %8 : vector<8x1xf32> to vector<8x256xf32>
    %16 = arith.addf %14, %15 : vector<8x256xf32>
    %cst_7 = arith.constant 0.000000e+00 : f32
    %17 = vector.broadcast %cst_7 : f32 to vector<8x256xf32>
    %18 = arith.maximumf %16, %17 : vector<8x256xf32>
    %c0_8 = arith.constant 0 : index
    %c0_9 = arith.constant 0 : index
    %19 = vector.load %arg4[%c0_8, %c0_9] : memref<32x32xf32, #tpu.memory_space<vmem>>, vector<32x32xf32>
    %cst_10 = arith.constant dense<0.000000e+00> : vector<32x256xf32>
    %20 = tpu.matmul %19, %6, %cst_10 {dimension_numbers = #tpu.dot_dimension_numbers<[1], [0], [0], [1], [0, 0, 1, 1], [], []>} : vector<32x32xf32>, vector<32x256xf32>, vector<32x256xf32> -> vector<32x256xf32>
    %21 = vector.broadcast %9 : vector<32x1xf32> to vector<32x256xf32>
    %22 = arith.addf %20, %21 : vector<32x256xf32>
    %cst_11 = arith.constant 0.000000e+00 : f32
    %23 = vector.broadcast %cst_11 : f32 to vector<32x256xf32>
    %24 = arith.maximumf %22, %23 : vector<32x256xf32>
    %25 = vector.broadcast %11 : vector<8x1xf32> to vector<8x256xf32>
    %26 = arith.mulf %18, %25 : vector<8x256xf32>
    %cst_12 = arith.constant dense<0.000000e+00> : vector<256xf32>
    %27 = vector.multi_reduction <add>, %26, %cst_12 [0] : vector<8x256xf32> to vector<256xf32>
    %28 = vector.shape_cast %27 : vector<256xf32> to vector<1x256xf32>
    %29 = vector.broadcast %12 : vector<32x1xf32> to vector<32x256xf32>
    %30 = arith.mulf %24, %29 : vector<32x256xf32>
    %cst_13 = arith.constant dense<0.000000e+00> : vector<256xf32>
    %31 = vector.multi_reduction <add>, %30, %cst_13 [0] : vector<32x256xf32> to vector<256xf32>
    %32 = vector.shape_cast %31 : vector<256xf32> to vector<1x256xf32>
    %33 = arith.addf %28, %32 : vector<1x256xf32>
    %34 = vector.broadcast %10 : vector<1x1xf32> to vector<1x256xf32>
    %35 = arith.addf %33, %34 : vector<1x256xf32>
    %c0_14 = arith.constant 0 : index
    %c0_15 = arith.constant 0 : index
    %36 = vector.load %arg6[%c0_14, %c0_15] : memref<1x256xf32, #tpu.memory_space<vmem>>, vector<1x256xf32>
    tpu.vector_store %arg6[%c0_14, %c0_15], %35 {strides = array<i32>} : memref<1x256xf32, #tpu.memory_space<vmem>>, vector<1x256xf32>,
    return
  }
  func.func @transform_0(%arg0: i32) -> (i32, i32) {
    %c0_i32 = arith.constant 0 : i32
    %c0_i32_0 = arith.constant 0 : i32
    return %arg0, %c0_i32 : i32, i32
  }
  func.func @transform_1(%arg0: i32) -> (i32, i32) {
    %c0_i32 = arith.constant 0 : i32
    %c0_i32_0 = arith.constant 0 : i32
    return %arg0, %c0_i32 : i32, i32
  }
  func.func @transform_2(%arg0: i32) -> (i32, i32) {
    %c0_i32 = arith.constant 0 : i32
    %c0_i32_0 = arith.constant 0 : i32
    %c0_i32_1 = arith.constant 0 : i32
    return %c0_i32, %c0_i32_0 : i32, i32
  }
  func.func @transform_3(%arg0: i32) -> (i32, i32) {
    %c0_i32 = arith.constant 0 : i32
    %c0_i32_0 = arith.constant 0 : i32
    %c0_i32_1 = arith.constant 0 : i32
    return %c0_i32, %c0_i32_0 : i32, i32
  }
  func.func @transform_4(%arg0: i32) -> (i32, i32) {
    %c0_i32 = arith.constant 0 : i32
    %c0_i32_0 = arith.constant 0 : i32
    %c0_i32_1 = arith.constant 0 : i32
    return %c0_i32, %c0_i32_0 : i32, i32
  }
  func.func @transform_5(%arg0: i32) -> (i32, i32) {
    %c0_i32 = arith.constant 0 : i32
    %c0_i32_0 = arith.constant 0 : i32
    return %c0_i32, %arg0 : i32, i32
  }
}

</mosaic_0001>

<bundles_post_ra>
// kernel: tpu_custom_call.1
= control target key start
LH: loop header
LB: loop body
LE: loop exit
PB: predicated region body
PF: predicated region fallthrough
CT: control target
= control target key end

     0   :  { %s891_s0 = inlined_call_operand.vmem [shape: f32[256,8], index: 0, kind: input, shape index: {}]   ;;  %s892_s1 = inlined_call_operand.vmem [shape: f32[256,64], index: 1, kind: input, shape index: {}]   ;;  %s893_s2 = inlined_call_operand.vmem [shape: f32[8,8], index: 2, kind: input, shape index: {}]   ;;  %s894_s3 = inlined_call_operand.vmem [shape: f32[32,32], index: 3, kind: input, shape index: {}]   ;;  %s895_s4 = inlined_call_operand.vmem [shape: f32[41,2], index: 4, kind: input, shape index: {}]   ;;  %s896_s5 = inlined_call_operand.hbm [shape: f32[1,256], index: 5, kind: output, shape index: {}]  }
   0x1   :  { %v69_v0 = vld [vmem:[%s892_s1 + $0x80] sm:$0xff] }
   0x2   :  { %v53_v1 = vld [vmem:[%s892_s1] sm:$0xff]  ;;  %117 = vxpose.xlu0.b32.start [1/16] (narrow) %v69_v0, 64 }
   0x3   :  { %85 = vxpose.xlu1.b32.start [1/16] (narrow) %v53_v1, 64 }
   0x4   :  { %10 = vsyncpa [#allocation3], 0  ;;  %v70_v2 = vld [vmem:[%s892_s1 + $0x88] sm:$0xff]  ;;  %v71_v4 = vld [vmem:[%s892_s1 + $0x90] sm:$0xff]  ;;  %vm169_vm0 = vcmask 64512   ;;  %v585_v28 = vmov 0  }
   0x5   :  { %v54_v3 = vld [vmem:[%s892_s1 + $0x8] sm:$0xff]  ;;  %v55_v5 = vld [vmem:[%s892_s1 + $0x10] sm:$0xff]  ;;  %v72_v6 = vld [vmem:[%s892_s1 + $0x98] sm:$0xff]  ;;  %555 = vset.pattern.permute.xlu2 %v585_v28  ;;  %vm335_vm1 = vcmask 261120   ;;  %s501_s16 = sshll.u32 %s896_s5, 4  ;;  %vm486_vm2 = vcmask 1040384   ;;  %s502_s16 = int_to_ptr.hbm [resolvable:$true] %s501_s16 }
   0x6   :  { %v56_v7 = vld [vmem:[%s892_s1 + $0x18] sm:$0xff]  ;;  %v73_v8 = vld [vmem:[%s892_s1 + $0xa0] sm:$0xff]  ;;  %v74_v10 = vld [vmem:[%s892_s1 + $0xa8] sm:$0xff] }
   0x7   :  { %v57_v9 = vld [vmem:[%s892_s1 + $0x20] sm:$0xff]  ;;  %v58_v11 = vld [vmem:[%s892_s1 + $0x28] sm:$0xff]  ;;  %v75_v12 = vld [vmem:[%s892_s1 + $0xb0] sm:$0xff] }
   0x8   :  { %v59_v13 = vld [vmem:[%s892_s1 + $0x30] sm:$0xff]  ;;  %v76_v14 = vld [vmem:[%s892_s1 + $0xb8] sm:$0xff]  ;;  %v77_v16 = vld [vmem:[%s892_s1 + $0xc0] sm:$0xff] }
   0x9   :  { %v60_v15 = vld [vmem:[%s892_s1 + $0x38] sm:$0xff]  ;;  %v61_v17 = vld [vmem:[%s892_s1 + $0x40] sm:$0xff]  ;;  %v78_v18 = vld [vmem:[%s892_s1 + $0xc8] sm:$0xff] }
   0xa   :  { %118 = vxpose.xlu0.b32.cont [2/16] (narrow) %v70_v2, 64  ;;  %v62_v19 = vld [vmem:[%s892_s1 + $0x48] sm:$0xff]  ;;  %v79_v20 = vld [vmem:[%s892_s1 + $0xd0] sm:$0xff]  ;;  %v80_v22 = vld [vmem:[%s892_s1 + $0xd8] sm:$0xff] }
   0xb   :  { %86 = vxpose.xlu1.b32.cont [2/16] (narrow) %v54_v3, 64  ;;  %v63_v21 = vld [vmem:[%s892_s1 + $0x50] sm:$0xff]  ;;  %v64_v23 = vld [vmem:[%s892_s1 + $0x58] sm:$0xff]  ;;  %v81_v29 = vld [vmem:[%s892_s1 + $0xe0] sm:$0xff] }
   0xc   :  { %v36_v24 = vld [vmem:[%s891_s0 + $0x78] sm:$0xff]  ;;  %v35_v26 = vld [vmem:[%s891_s0 + $0x70] sm:$0xff]  ;;  %v65_v30 = vld [vmem:[%s892_s1 + $0x60] sm:$0xff] }
   0xd   :  { %v52_v25 = vld [vmem:[%s891_s0 + $0xf8] sm:$0xff]  ;;  %510 = vmatpush.xpose.msk.msra.mxu0 %vm169_vm0, %v36_v24  ;;  %v51_v27 = vld [vmem:[%s891_s0 + $0xf0] sm:$0xff]  ;;  %v716_v31 = vld [vmem:[%s895_s4] sm:$0xff] }
   0xe   :  { %527 = vmatpush.xpose.msk.msra.mxu1 %vm169_vm0, %v52_v25  ;;  %v34_v32 = vld [vmem:[%s891_s0 + $0x68] sm:$0xff]  ;;  %166 = vperm.xlu2 %555, %v716_v31   ;;  %v33_v34 = vld [vmem:[%s891_s0 + $0x60] sm:$0xff]  ;;  %v32_v39 = vld [vmem:[%s891_s0 + $0x58] sm:$0xff] }
   0xf   :  { %v50_v33 = vld [vmem:[%s891_s0 + $0xe8] sm:$0xff]  ;;  %v49_v35 = vld [vmem:[%s891_s0 + $0xe0] sm:$0xff]  ;;  %v48_v40 = vld [vmem:[%s891_s0 + $0xd8] sm:$0xff] }
  0x10   :  { %v736_v36 = vld [vmem:[%s895_s4 + $0x8] sm:$0xff]  ;;  %v31_v41 = vld [vmem:[%s891_s0 + $0x50] sm:$0xff]  ;;  %v29_v47 = vld [vmem:[%s891_s0 + $0x40] sm:$0xff] }
  0x11   :  { %511 = vmatpush.xpose.msk.msra.mxu0 %vm169_vm0, %v35_v26  ;;  %v82_v37 = vld [vmem:[%s892_s1 + $0xe8] sm:$0xff]  ;;  %v47_v42 = vld [vmem:[%s891_s0 + $0xd0] sm:$0xff]  ;;  %v45_v48 = vld [vmem:[%s891_s0 + $0xc0] sm:$0xff] }
  0x12   :  { %119 = vxpose.xlu0.b32.cont [3/16] (narrow) %v71_v4, 64  ;;  %528 = vmatpush.xpose.msk.msra.mxu1 %vm169_vm0, %v51_v27  ;;  %v66_v38 = vld [vmem:[%s892_s1 + $0x68] sm:$0xff]  ;;  %v83_v43 = vld [vmem:[%s892_s1 + $0xf0] sm:$0xff]  ;;  %v84_v49 = vld [vmem:[%s892_s1 + $0xf8] sm:$0xff] }
  0x13   :  { %87 = vxpose.xlu1.b32.cont [3/16] (narrow) %v55_v5, 64  ;;  %v67_v44 = vld [vmem:[%s892_s1 + $0x70] sm:$0xff]  ;;  %v30_v45 = vld [vmem:[%s891_s0 + $0x48] sm:$0xff]  ;;  %v68_v50 = vld [vmem:[%s892_s1 + $0x78] sm:$0xff] }
  0x14   :  { %v46_v46 = vld [vmem:[%s891_s0 + $0xc8] sm:$0xff]  ;;  %v28_v51 = vld [vmem:[%s891_s0 + $0x38] sm:$0xff]  ;;  %v27_v53 = vld [vmem:[%s891_s0 + $0x30] sm:$0xff] }
  0x15   :  { %512 = vmatpush.xpose.msk.msra.mxu0 %vm169_vm0, %v34_v32  ;;  %v44_v52 = vld [vmem:[%s891_s0 + $0xb8] sm:$0xff]  ;;  %v43_v54 = vld [vmem:[%s891_s0 + $0xb0] sm:$0xff]  ;;  %v26_v55 = vld [vmem:[%s891_s0 + $0x28] sm:$0xff] }
  0x16   :  { %529 = vmatpush.xpose.msk.msra.mxu1 %vm169_vm0, %v50_v33  ;;  %317 = vperm.xlu2 %555, %v736_v36   ;;  %v42_v56 = vld [vmem:[%s891_s0 + $0xa8] sm:$0xff]  ;;  %v159_v57 = vld [vmem:[%s895_s4 + $0x10] sm:$0xff]  ;;  %v25_v58 = vld [vmem:[%s891_s0 + $0x20] sm:$0xff] }
  0x17   :  { %v41_v59 = vld [vmem:[%s891_s0 + $0xa0] sm:$0xff]  ;;  %v24_v60 = vld [vmem:[%s891_s0 + $0x18] sm:$0xff]  ;;  %v23_v63 = vld [vmem:[%s891_s0 + $0x10] sm:$0xff] }
  0x18   :  { %v40_v61 = vld [vmem:[%s891_s0 + $0x98] sm:$0xff]  ;;  %v39_v0 = vld [vmem:[%s891_s0 + $0x90] sm:$0xff]  ;;  %v22_v1 = vld [vmem:[%s891_s0 + $0x8] sm:$0xff] }
  0x19   :  { %513 = vmatpush.xpose.msk.msra.mxu0 %vm169_vm0, %v33_v34  ;;  %v160_v62 = vld [vmem:[%s895_s4 + $0x18] sm:$0xff]  ;;  %v38_v2 = vld [vmem:[%s891_s0 + $0x88] sm:$0xff]  ;;  %v161_v3 = vld [vmem:[%s895_s4 + $0x20] sm:$0xff] }
  0x1a   :  { %120 = vxpose.xlu0.b32.cont [4/16] (narrow) %v72_v6, 64  ;;  %530 = vmatpush.xpose.msk.msra.mxu1 %vm169_vm0, %v49_v35  ;;  %v21_v4 = vld [vmem:[%s891_s0] sm:$0xff]  ;;  %v313_v34 = vld [vmem:[%s894_s3 + $0x10] sm:$0xff]  ;;  %v314_v35 = vld [vmem:[%s894_s3 + $0x18] sm:$0xff] }
  0x1b   :  { %88 = vxpose.xlu1.b32.cont [4/16] (narrow) %v56_v7, 64  ;;  %v37_v5 = vld [vmem:[%s891_s0 + $0x80] sm:$0xff]  ;;  %v586_v7 = vmov 1  }
  0x1c   :  { %v163_v6 = vld [vmem:[%s893_s2] sm:$0xff] }
  0x1d   :  { %514 = vmatpush.xpose.msk.msra.mxu0 %vm169_vm0, %v32_v39  ;;  %v311_v33 = vld [vmem:[%s894_s3] sm:$0xff] }
  0x1e   :  { %531 = vmatpush.xpose.msk.msra.mxu1 %vm169_vm0, %v48_v40  ;;  %322 = vperm.xlu2 %555, %v159_v57  }
  0x21   :  { %515 = vmatpush.xpose.msk.msra.mxu0 %vm169_vm0, %v31_v41 }
  0x22   :  { %121 = vxpose.xlu0.b32.cont [5/16] (narrow) %v73_v8, 64  ;;  %532 = vmatpush.xpose.msk.msra.mxu1 %vm169_vm0, %v47_v42 }
  0x23   :  { %89 = vxpose.xlu1.b32.cont [5/16] (narrow) %v57_v9, 64 }
  0x25   :  { %516 = vmatpush.xpose.msk.msra.mxu0 %vm169_vm0, %v30_v45 }
  0x26   :  { %533 = vmatpush.xpose.msk.msra.mxu1 %vm169_vm0, %v46_v46  ;;  %327 = vperm.xlu2 %555, %v160_v62  }
  0x29   :  { %517 = vmatpush.xpose.msk.msra.mxu0 %vm169_vm0, %v29_v47 }
  0x2a   :  { %122 = vxpose.xlu0.b32.cont [6/16] (narrow) %v74_v10, 64  ;;  %534 = vmatpush.xpose.msk.msra.mxu1 %vm169_vm0, %v45_v48 }
  0x2b   :  { %90 = vxpose.xlu1.b32.cont [6/16] (narrow) %v58_v11, 64 }
  0x2d   :  { %518 = vmatpush.xpose.msk.msra.mxu0 %vm169_vm0, %v28_v51 }
  0x2e   :  { %535 = vmatpush.xpose.msk.msra.mxu1 %vm169_vm0, %v44_v52  ;;  %332 = vperm.xlu2 %555, %v161_v3  }
  0x31   :  { %519 = vmatpush.xpose.msk.msra.mxu0 %vm169_vm0, %v27_v53 }
  0x32   :  { %123 = vxpose.xlu0.b32.cont [7/16] (narrow) %v75_v12, 64  ;;  %536 = vmatpush.xpose.msk.msra.mxu1 %vm169_vm0, %v43_v54 }
  0x33   :  { %91 = vxpose.xlu1.b32.cont [7/16] (narrow) %v59_v13, 64 }
  0x35   :  { %520 = vmatpush.xpose.msk.msra.mxu0 %vm169_vm0, %v26_v55 }
  0x36   :  { %537 = vmatpush.xpose.msk.msra.mxu1 %vm169_vm0, %v42_v56  ;;  %556 = vset.pattern.permute.xlu2 %v586_v7 }
  0x37   :  { %433 = vperm.xlu2 %556, %v736_v36   ;;  %v162_v36 = vld [vmem:[%s895_s4 + $0x28] sm:$0x1] }
  0x39   :  { %521 = vmatpush.xpose.msk.msra.mxu0 %vm169_vm0, %v25_v58 }
  0x3a   :  { %124 = vxpose.xlu0.b32.cont [8/16] (narrow) %v76_v14, 64  ;;  %538 = vmatpush.xpose.msk.msra.mxu1 %vm169_vm0, %v41_v59 }
  0x3b   :  { %92 = vxpose.xlu1.b32.cont [8/16] (narrow) %v60_v15, 64 }
  0x3d   :  { %522 = vmatpush.xpose.msk.msra.mxu0 %vm169_vm0, %v24_v60 }
  0x3e   :  { %539 = vmatpush.xpose.msk.msra.mxu1 %vm169_vm0, %v40_v61 }
  0x3f   :  { %437 = vperm.xlu2 %556, %v159_v57  }
  0x41   :  { %523 = vmatpush.xpose.msk.msra.mxu0 %vm169_vm0, %v23_v63 }
  0x42   :  { %125 = vxpose.xlu0.b32.cont [9/16] (narrow) %v77_v16, 64  ;;  %540 = vmatpush.xpose.msk.msra.mxu1 %vm169_vm0, %v39_v0 }
  0x43   :  { %93 = vxpose.xlu1.b32.cont [9/16] (narrow) %v61_v17, 64 }
  0x45   :  { %524 = vmatpush.xpose.msk.msra.mxu0 %vm169_vm0, %v22_v1 }
  0x46   :  { %541 = vmatpush.xpose.msk.msra.mxu1 %vm169_vm0, %v38_v2 }
  0x47   :  { %441 = vperm.xlu2 %556, %v160_v62  }
  0x49   :  { %525 = vmatpush.xpose.msk.msra.mxu0 %vm169_vm0, %v21_v4 }
  0x4a   :  { %126 = vxpose.xlu0.b32.cont [10/16] (narrow) %v78_v18, 64  ;;  %542 = vmatpush.xpose.msk.msra.mxu1 %vm169_vm0, %v37_v5 }
  0x4b   :  { %94 = vxpose.xlu1.b32.cont [10/16] (narrow) %v62_v19, 64 }
  0x4c   :  { %526 = vmatmul.msk.f32.vlgmr.msra.gmra.mxu0 %vm169_vm0, %v163_v6 }
  0x4d   :  { %543 = vmatmul.msk.f32.vlgmr.msra.gmra.mxu1 %vm169_vm0, %v163_v6 }
  0x4f   :  { %445 = vperm.xlu2 %556, %v161_v3  }
  0x52   :  { %127 = vxpose.xlu0.b32.cont [11/16] (narrow) %v79_v20, 64 }
  0x53   :  { %95 = vxpose.xlu1.b32.cont [11/16] (narrow) %v63_v21, 64 }
  0x57   :  { %415 = vperm.xlu2 %556, %v716_v31  }
  0x5a   :  { %128 = vxpose.xlu0.b32.cont [12/16] (narrow) %v80_v22, 64 }
  0x5b   :  { %96 = vxpose.xlu1.b32.cont [12/16] (narrow) %v64_v23, 64 }
  0x5f   :  { %557 = vset.pattern.permute.xlu2 %v585_v28 }
  0x60   :  { %478 = vperm.xlu2 %557, %v162_v36  }
  0x62   :  { %129 = vxpose.xlu0.b32.cont [13/16] (narrow) %v81_v29, 64 }
  0x63   :  { %97 = vxpose.xlu1.b32.cont [13/16] (narrow) %v65_v30, 64 }
  0x6a   :  { %130 = vxpose.xlu0.b32.cont [14/16] (narrow) %v82_v37, 64  ;;  %v167_v37 = vpop.permute.xlu2 %166 }
  0x6b   :  { %98 = vxpose.xlu1.b32.cont [14/16] (narrow) %v66_v38, 64 }
  0x72   :  { %131 = vxpose.xlu0.b32.cont [15/16] (narrow) %v83_v43, 64  ;;  %v318_v38 = vpop.permute.xlu2 %317 }
  0x73   :  { %99 = vxpose.xlu1.b32.cont [15/16] (narrow) %v67_v44, 64 }
  0x7a   :  { %132 = vxpose.xlu0.b32.end [16/16] (narrow) %v84_v49, 64  ;;  %v323_v39 = vpop.permute.xlu2 %322 }
  0x7b   :  { %100 = vxpose.xlu1.b32.end [16/16] (narrow) %v68_v50, 64 }
  0x82   :  { %v328_v40 = vpop.permute.xlu2 %327 }
  0x8a   :  { %v333_v41 = vpop.permute.xlu2 %332 }
  0x92   :  { %v434_v42 = vpop.permute.xlu2 %433 }
  0x9a   :  { %v438_v43 = vpop.permute.xlu2 %437 }
  0xa2   :  { %v442_v44 = vpop.permute.xlu2 %441 }
  0xa6   :  { %v133_v8 = vpop.trf.xlu0 }
  0xa7   :  { %v101_v9 = vpop.trf.xlu1 }
  0xaa   :  { %v446_v47 = vpop.permute.xlu2 %445 }
  0xae   :  { %v134_v10 = vpop.trf.xlu0 }
  0xaf   :  { %v102_v11 = vpop.trf.xlu1 }
  0xb2   :  { %v416_v56 = vpop.permute.xlu2 %415 }
  0xb6   :  { %v135_v12 = vpop.trf.xlu0 }
  0xb7   :  { %v103_v13 = vpop.trf.xlu1 }
  0xbe   :  { %v136_v14 = vpop.trf.xlu0 }
  0xbf   :  { %v104_v15 = vpop.trf.xlu1 }
  0xc6   :  { %v137_v16 = vpop.trf.xlu0 }
  0xc7   :  { %v105_v17 = vpop.trf.xlu1  ;;  %v150_v31 = vmul.f32 %v137_v16, %v133_v8 }
  0xc8   :  { %v149_v32 = vmul.f32 %v105_v17, %v101_v9 }
  0xc9   :  { %v286_v48 = vpop.f32.mrf.mxu0 }
  0xca   :  { %v306_v49 = vpop.f32.mrf.mxu1  ;;  %v287_v52 = vadd.f32 %v286_v48, %v167_v37 }
  0xcb   :  { %v307_v53 = vadd.f32 %v306_v49, %v167_v37 }
  0xcc   :  { %v309_v54 = vmax.f32 %v287_v52, 0.0 }
  0xcd   :  { %v310_v55 = vmax.f32 %v307_v53, 0.0  ;;  %v479_v53 = vpop.permute.xlu2 %478 }
  0xce   :  { %v138_v18 = vpop.trf.xlu0  ;;  %v418_v1 = vmul.f32 %v416_v56, %v309_v54 }
  0xcf   :  { %v106_v19 = vpop.trf.xlu1  ;;  %v152_v29 = vmul.f32 %v138_v18, %v134_v10  ;;  %v419_v2 = vmul.f32 %v416_v56, %v310_v55  ;;  %v489_v56 = vlaneseq }
  0xd0   :  { %v151_v30 = vmul.f32 %v106_v19, %v102_v11  ;;  %v420_v9 = vrot.slane %v418_v1, 4 }
  0xd1   :  { %v426_v10 = vrot.slane %v419_v2, 4  ;;  %vm491_vm3 = vcmp.lt.s32.totalorder %v489_v56, 256 }
  0xd6   :  { %v139_v20 = vpop.trf.xlu0 }
  0xd7   :  { %v107_v21 = vpop.trf.xlu1  ;;  %v154_v26 = vmul.f32 %v139_v20, %v135_v12 }
  0xd8   :  { %v153_v27 = vmul.f32 %v107_v21, %v103_v13  ;;  %v421_v21 = vadd.f32 %v420_v9, %v418_v1 }
  0xde   :  { %v140_v22 = vpop.trf.xlu0 }
  0xdf   :  { %v108_v23 = vpop.trf.xlu1  ;;  %v156_v25 = vmul.f32 %v140_v22, %v136_v14  ;;  %v427_v22 = vadd.f32 %v426_v10, %v419_v2 }
  0xe0   :  { %v155_v24 = vmul.f32 %v108_v23, %v104_v15 }
  0xe1   :  { %389 = vmatpush.msra.mxu3 %v156_v25  ;;  %558 = vset.pattern.permute.xlu0 %v585_v28  ;;  %v312_v28 = vld [vmem:[%s894_s3 + $0x8] sm:$0xff]  ;;  %s587_s3 = smov [#allocation2]  }
  0xe2   :  { %360 = vmatpush.msra.mxu2 %v155_v24  ;;  %s499_s4 = sshll.u32 %s587_s3, 4  ;;  %s500_s4 = int_to_ptr.vmem [resolvable:$true] %s499_s4 }
  0xe3   :  { %390 = vmatpush.msra.mxu3 %v154_v26 }
  0xe4   :  { %361 = vmatpush.msra.mxu2 %v153_v27 }
  0xe5   :  { %391 = vmatpush.msra.mxu3 %v152_v29 }
  0xe6   :  { %362 = vmatpush.msra.mxu2 %v151_v30 }
  0xe7   :  { %392 = vmatpush.msra.mxu3 %v150_v31 }
  0xe8   :  { %363 = vmatpush.msra.mxu2 %v149_v32  ;;  %548 = vmatmul.msk.f32.vlgmr.msra.gmra.mxu3 %vm335_vm1, %v311_v33  ;;  %v422_v32 = vrot.slane %v421_v21, 2 }
  0xe9   :  { %544 = vmatmul.msk.f32.vlgmr.msra.gmra.mxu2 %vm335_vm1, %v311_v33  ;;  %v428_v33 = vrot.slane %v427_v22, 2 }
  0xea   :  { %v423_v37 = vadd.f32 %v422_v32, %v421_v21 }
  0xf0   :  { %549 = vmatmul.msk.f32.gmra.mxu3 %vm335_vm1, %v312_v28 }
  0xf1   :  { %545 = vmatmul.msk.f32.gmra.mxu2 %vm335_vm1, %v312_v28 }
  0xf8   :  { %550 = vmatmul.msk.f32.gmra.mxu3 %vm335_vm1, %v313_v34 }
  0xf9   :  { %546 = vmatmul.msk.f32.gmra.mxu2 %vm335_vm1, %v313_v34 }
 0x100   :  { %551 = vmatmul.msk.f32.gmra.mxu3 %vm335_vm1, %v314_v35 }
 0x101   :  { %547 = vmatmul.msk.f32.gmra.mxu2 %vm335_vm1, %v314_v35 }
 0x16b   :  { %v394_v46 = vpop.f32.mrf.mxu3 }
 0x16c   :  { %v365_v45 = vpop.f32.mrf.mxu2  ;;  %v395_v60 = vadd.f32 %v394_v46, %v318_v38 }
 0x16d   :  { %v366_v59 = vadd.f32 %v365_v45, %v318_v38  ;;  %v429_v38 = vadd.f32 %v428_v33, %v427_v22 }
 0x16e   :  { %v407_v6 = vmax.f32 %v395_v60, 0.0 }
 0x16f   :  { %v406_v5 = vmax.f32 %v366_v59, 0.0 }
 0x170   :  { %v449_v14 = vmul.f32 %v434_v42, %v407_v6 }
 0x171   :  { %v448_v13 = vmul.f32 %v434_v42, %v406_v5 }
 0x173   :  { %v397_v51 = vpop.f32.mrf.mxu3 }
 0x174   :  { %v368_v50 = vpop.f32.mrf.mxu2  ;;  %v398_v58 = vadd.f32 %v397_v51, %v323_v39 }
 0x175   :  { %v369_v57 = vadd.f32 %v368_v50, %v323_v39 }
 0x176   :  { %v409_v4 = vmax.f32 %v398_v58, 0.0 }
 0x177   :  { %v408_v3 = vmax.f32 %v369_v57, 0.0 }
 0x178   :  { %v451_v12 = vmul.f32 %v438_v43, %v409_v4 }
 0x179   :  { %v450_v11 = vmul.f32 %v438_v43, %v408_v3  ;;  %v424_v43 = vrot.slane %v423_v37, 1 }
 0x17a   :  { %v465_v24 = vadd.f32 %v451_v12, %v449_v14 }
 0x17b   :  { %v400_v62 = vpop.f32.mrf.mxu3  ;;  %v456_v23 = vadd.f32 %v450_v11, %v448_v13  ;;  %v425_v50 = vadd.f32 %v424_v43, %v423_v37 }
 0x17c   :  { %v371_v61 = vpop.f32.mrf.mxu2  ;;  %v401_v0 = vadd.f32 %v400_v62, %v328_v40 }
 0x17d   :  { %v372_v63 = vadd.f32 %v371_v61, %v328_v40 }
 0x17e   :  { %v411_v8 = vmax.f32 %v401_v0, 0.0 }
 0x17f   :  { %v410_v7 = vmax.f32 %v372_v63, 0.0 }
 0x180   :  { %v453_v18 = vmul.f32 %v442_v44, %v411_v8 }
 0x181   :  { %v452_v17 = vmul.f32 %v442_v44, %v410_v7  ;;  %v430_v44 = vrot.slane %v429_v38, 1 }
 0x182   :  { %v466_v29 = vadd.f32 %v465_v24, %v453_v18 }
 0x183   :  { %v403_v16 = vpop.f32.mrf.mxu3  ;;  %v457_v27 = vadd.f32 %v456_v23, %v452_v17 }
 0x184   :  { %v374_v15 = vpop.f32.mrf.mxu2  ;;  %v404_v20 = vadd.f32 %v403_v16, %v333_v41 }
 0x185   :  { %v375_v19 = vadd.f32 %v374_v15, %v333_v41 }
 0x186   :  { %v413_v26 = vmax.f32 %v404_v20, 0.0 }
 0x187   :  { %v412_v25 = vmax.f32 %v375_v19, 0.0 }
 0x188   :  { %v455_v31 = vmul.f32 %v446_v47, %v413_v26 }
 0x189   :  { %v454_v30 = vmul.f32 %v446_v47, %v412_v25  ;;  %v431_v47 = vadd.f32 %v430_v44, %v429_v38 }
 0x18a   :  { %v467_v34 = vadd.f32 %v466_v29, %v455_v31 }
 0x18b   :  { %v458_v28 = vadd.f32 %v457_v27, %v454_v30 }
 0x18c   :  { %v468_v36 = vrot.slane %v467_v34, 4 }
 0x18d   :  { %v459_v35 = vrot.slane %v458_v28, 4 }
 0x18e   :  { %v469_v40 = vadd.f32 %v468_v36, %v467_v34 }
 0x18f   :  { %v460_v39 = vadd.f32 %v459_v35, %v458_v28 }
 0x190   :  { %v470_v42 = vrot.slane %v469_v40, 2 }
 0x191   :  { %v461_v41 = vrot.slane %v460_v39, 2 }
 0x192   :  { %v471_v46 = vadd.f32 %v470_v42, %v469_v40 }
 0x193   :  { %v462_v45 = vadd.f32 %v461_v41, %v460_v39 }
 0x194   :  { %v472_v49 = vrot.slane %v471_v46, 1 }
 0x195   :  { %v463_v48 = vrot.slane %v462_v45, 1 }
 0x196   :  { %v473_v52 = vadd.f32 %v472_v49, %v471_v46 }
 0x197   :  { %v464_v51 = vadd.f32 %v463_v48, %v462_v45 }
 0x198   :  { %v475_v55 = vadd.f32 %v473_v52, %v431_v47 }
 0x199   :  { %v474_v54 = vadd.f32 %v464_v51, %v425_v50 }
 0x19a   :  { %v482_v57 = vadd.f32 %v479_v53, %v475_v55 }
 0x19b   :  { %v481_v58 = vadd.f32 %v479_v53, %v474_v54 }
 0x19c   :  { %v485_v59 = vrot.slane %v482_v57, 7 }
 0x19e   :  { %v487_v60 = vsel %vm486_vm2, %v481_v58, %v485_v59 }
 0x19f   :  { %493 = vst.msk [vmem:[#allocation2] sm:$0x3] %vm491_vm3, %v487_v60 }
 0x1a0   :  { %504 = dma.vmem_to_hbm [thread:$0]  %s500_s4, 32, %s502_s16, [#allocation3]  }
 0x1a1   :  { %583 = dma.done.wait [#allocation3], 32  }
 0x1a2   :  { %584 = vsyncadd [#allocation3], 4294967264 }
 0x1a3   :  { %509 = vsyncpa [#allocation3], 1 }

</bundles_post_ra>
